<compile_context>
chip_gen: v7x
topology: tpu7x:2x2x1
jax: 0.10.0
libtpu: 0.0.40
codegen_flags: <defaults>
</compile_context>

<pallas_src>
import functools
import math

import jax
import jax.numpy as jnp
from jax import lax
from jax.experimental import pallas as pl
from jax.experimental.pallas import tpu as pltpu


def _embedder_kernel(x_ref, out_ref, *, dims, outdim, half, neg_log_max_period):
    """One row-tile.

    x_ref:   (rows, dims)           f32 scalar conditions
    out_ref: (rows, dims * outdim)  embeddings, already in '(d d2)' layout
    """
    rows = x_ref.shape[0]

    # --- per-lane tables, built once per tile (EUP/XLU slots otherwise idle) ---
    blk = lax.broadcasted_iota(jnp.int32, (1, outdim), 1)        # 0..outdim-1
    lane_in = jnp.concatenate([blk] * dims, axis=-1)             # (1, dims*outdim)
    is_cos = lane_in < half
    k = jnp.where(is_cos, lane_in, lane_in - half).astype(jnp.float32)
    # Same rounding order as the reference: (k * -log(max_period)) / half.
    freq = jnp.exp(k * neg_log_max_period / half)                # (1, dims*outdim)
    if outdim % 2:
        # Odd outdim: trailing pad lane per block -> freq 0, sin(0) = 0.
        freq = jnp.where(lane_in >= 2 * half, 0.0, freq)

    # --- lane-dense expansion of the scalars: column j <- x[:, j // outdim] ---
    x_exp = jnp.concatenate(
        [jnp.broadcast_to(x_ref[:, d:d + 1], (rows, outdim)) for d in range(dims)],
        axis=-1)                                                 # (rows, dims*outdim)

    args = x_exp * freq                  # exact f32 multiply (matches reference)
    emb = jnp.where(is_cos, jnp.cos(args), jnp.sin(args))
    out_ref[...] = emb.astype(out_ref.dtype)   # single full-width store


def _round_down8(n):
    return max(8, (n // 8) * 8)


def _round_up8(n):
    return -(-n // 8) * 8


def concat_timestep_embedder_nd(x, outdim, max_period=10000.0,
                                out_dtype=jnp.float32, tile_rows=None):
    """Pallas implementation of ConcatTimestepEmbedderND.forward."""
    x = jnp.asarray(x)
    if x.ndim == 1:
        x = x[:, None]
    assert x.ndim == 2
    b, dims = x.shape
    half = outdim // 2
    out_w = dims * outdim

    if half == 0:
        # outdim in {0, 1}: the embedding is all zero-pad columns.
        return jnp.zeros((b, out_w), out_dtype)

    x32 = x.astype(jnp.float32)

    # --- lane-dense output slab: fold `pack` batch rows per kernel row so the
    # pallas output row width is a multiple of 128 (unmasked full-lane stores).
    pack = 128 // math.gcd(out_w, 128)
    if pack == 1 or pack > 8 or b < pack or b % pack != 0:
        pack = 1
    b_v, dims_v = b // pack, dims * pack
    out_w_v = dims_v * outdim
    x_v = x32.reshape(b_v, dims_v)

    # --- generation-aware row tiling (double-buffered VMEM budget) ---
    try:
        vmem_cap = int(pltpu.get_tpu_info().vmem_capacity_bytes)
    except Exception:  # pragma: no cover - conservative fallback (v7x per-TC)
        vmem_cap = 64 << 20
    budget = max(2 << 20, min(vmem_cap // 8, 16 << 20))          # per output buffer
    itemsize = jnp.dtype(out_dtype).itemsize
    bytes_per_row = out_w_v * itemsize + dims_v * 4
    max_rows = _round_down8(budget // bytes_per_row)
    tb = max_rows if tile_rows is None else min(max_rows, _round_down8(tile_rows))
    if tb >= b_v:
        if b_v >= 4096:
            # Keep >= 2 grid steps so ("parallel",) can shard across TCs.
            tb = min(b_v, _round_up8(pl.cdiv(b_v, 2)))
        else:
            tb = b_v
    grid = (pl.cdiv(b_v, tb),)

    kern = functools.partial(
        _embedder_kernel, dims=dims_v, outdim=outdim, half=half,
        neg_log_max_period=-math.log(max_period))

    cost = pl.CostEstimate(
        flops=4 * b_v * out_w_v,
        transcendentals=2 * b_v * out_w_v,
        bytes_accessed=b_v * (dims_v * 4 + out_w_v * itemsize),
    )

    emb_v = pl.pallas_call(
        kern,
        out_shape=jax.ShapeDtypeStruct((b_v, out_w_v), out_dtype),
        grid=grid,
        in_specs=[pl.BlockSpec((tb, dims_v), lambda i: (i, 0))],
        out_specs=pl.BlockSpec((tb, out_w_v), lambda i: (i, 0)),
        compiler_params=pltpu.CompilerParams(
            dimension_semantics=("parallel",),
            vmem_limit_bytes=min(vmem_cap // 2, 64 << 20),
        ),
        cost_estimate=cost,
    )(x_v)

    # Free (row-major, contiguous) view back to (b, dims*outdim).
    return emb_v.reshape(b, out_w)


def _reference(x, outdim, max_period=10000.0):
    """Pure-JAX reference (mirrors the PyTorch Timestep embedding)."""
    x = jnp.asarray(x)
    if x.ndim == 1:
        x = x[:, None]
    b, dims = x.shape
    half = outdim // 2
    t = x.reshape(b * dims).astype(jnp.float32)
    if half == 0:
        return jnp.zeros((b, dims * outdim), jnp.float32)
    freqs = jnp.exp(
        -math.log(max_period) * jnp.arange(half, dtype=jnp.float32) / half)
    args = t[:, None] * freqs[None, :]
    emb = jnp.concatenate([jnp.cos(args), jnp.sin(args)], axis=-1)
    if outdim % 2:
        emb = jnp.pad(emb, ((0, 0), (0, 1)))
    return emb.reshape(b, dims * outdim)


if __name__ == "__main__":
    key = jax.random.PRNGKey(0)
    D, OUTDIM = 3, 32   # SDXL-style: 3 scalar conditions, 32-dim embedding each

    # --- packed lane-dense path (b % 4 == 0 -> output viewed 128-lane aligned) ---
    x8 = jax.random.uniform(key, (8, D), dtype=jnp.float32) * 1024.0
    out8 = jax.block_until_ready(concat_timestep_embedder_nd(x8, OUTDIM))
    ref8 = _reference(x8, OUTDIM)
    assert out8.shape == (8, D * OUTDIM), out8.shape
    assert jnp.allclose(out8, ref8, atol=1e-4, rtol=1e-4), "mismatch (packed)"

    # --- unpacked fallback (b=2 not divisible by pack=4) ---
    x2 = jax.random.uniform(jax.random.PRNGKey(1), (2, D), dtype=jnp.float32) * 1024.0
    out2 = jax.block_until_ready(concat_timestep_embedder_nd(x2, OUTDIM))
    assert out2.shape == (2, D * OUTDIM)
    assert jnp.allclose(out2, _reference(x2, OUTDIM), atol=1e-4, rtol=1e-4), \
        "mismatch (unpacked)"

    # --- odd outdim (exercises in-kernel zero-pad lane) ---
    OUTDIM_ODD = 33
    out_odd = jax.block_until_ready(concat_timestep_embedder_nd(x8, OUTDIM_ODD))
    assert out_odd.shape == (8, D * OUTDIM_ODD)
    assert jnp.allclose(out_odd, _reference(x8, OUTDIM_ODD), atol=1e-4, rtol=1e-4), \
        "mismatch (odd outdim)"

    # --- multi-step grid with ragged last block, packed (b=100 -> 25 rows, tb=8) ---
    x100 = jax.random.uniform(jax.random.PRNGKey(2), (100, D), dtype=jnp.float32) * 1024.0
    out100 = jax.block_until_ready(
        concat_timestep_embedder_nd(x100, OUTDIM, tile_rows=8))
    assert out100.shape == (100, D * OUTDIM)
    assert jnp.allclose(out100, _reference(x100, OUTDIM), atol=1e-4, rtol=1e-4), \
        "mismatch (packed ragged grid)"

    # --- multi-step ragged grid, unpacked (b=22) ---
    x22 = jax.random.uniform(jax.random.PRNGKey(3), (22, D), dtype=jnp.float32) * 1024.0
    out22 = jax.block_until_ready(
        concat_timestep_embedder_nd(x22, OUTDIM, tile_rows=8))
    assert out22.shape == (22, D * OUTDIM)
    assert jnp.allclose(out22, _reference(x22, OUTDIM), atol=1e-4, rtol=1e-4), \
        "mismatch (unpacked ragged grid)"

    # --- 1-D input path (x.ndim == 1) ---
    x1d = jax.random.uniform(jax.random.PRNGKey(4), (8,), dtype=jnp.float32) * 1024.0
    out1d = jax.block_until_ready(concat_timestep_embedder_nd(x1d, OUTDIM))
    assert out1d.shape == (8, OUTDIM)
    assert jnp.allclose(out1d, _reference(x1d, OUTDIM), atol=1e-4, rtol=1e-4), \
        "mismatch (1-D input)"

    print("KERNEL_OK")
</pallas_src>

<mosaic_0001>
module attributes {stable_mosaic.version = 11 : i64} {
  func.func @_embedder_kernel(%arg0: i32, %arg1: memref<2x12xf32, #tpu.memory_space<vmem>>, %arg2: memref<2x384xf32, #tpu.memory_space<vmem>>) attributes {dimension_semantics = [#tpu.dimension_semantics<parallel>], iteration_bounds = array<i64: 1>, scalar_prefetch = 0 : i64, scratch_operands = 0 : i64, tpu.core_type = #tpu.core_type<tc>, window_params = [{transform_indices = @transform_0, window_bounds = array<i64: 2, 12>}, {transform_indices = @transform_1, window_bounds = array<i64: 2, 384>}]} {
    %0 = tpu.iota {dimensions = array<i32: 1>} : vector<1x32xi32>
    %1 = tpu.concatenate %0, %0, %0, %0, %0, %0, %0, %0, %0, %0, %0, %0 in 1 : vector<1x32xi32>, vector<1x32xi32>, vector<1x32xi32>, vector<1x32xi32>, vector<1x32xi32>, vector<1x32xi32>, vector<1x32xi32>, vector<1x32xi32>, vector<1x32xi32>, vector<1x32xi32>, vector<1x32xi32>, vector<1x32xi32> -> vector<1x384xi32>
    %c16_i32 = arith.constant 16 : i32
    %2 = vector.broadcast %c16_i32 : i32 to vector<1x384xi32>
    %3 = arith.cmpi slt, %1, %2 : vector<1x384xi32>
    %c16_i32_0 = arith.constant 16 : i32
    %4 = vector.broadcast %c16_i32_0 : i32 to vector<1x384xi32>
    %5 = arith.subi %1, %4 : vector<1x384xi32>
    %6 = arith.select %3, %1, %5 : vector<1x384xi1>, vector<1x384xi32>
    %7 = arith.sitofp %6 : vector<1x384xi32> to vector<1x384xf32>
    %cst = arith.constant -9.21034049 : f32
    %8 = vector.broadcast %cst : f32 to vector<1x384xf32>
    %9 = arith.mulf %7, %8 : vector<1x384xf32>
    %cst_1 = arith.constant 1.600000e+01 : f32
    %10 = vector.broadcast %cst_1 : f32 to vector<1x384xf32>
    %11 = arith.divf %9, %10 : vector<1x384xf32>
    %12 = math.exp %11 : vector<1x384xf32>
    %c0 = arith.constant 0 : index
    %c0_2 = arith.constant 0 : index
    %13 = vector.load %arg1[%c0, %c0_2] : memref<2x12xf32, #tpu.memory_space<vmem>>, vector<2x1xf32>
    %14 = vector.shape_cast %13 : vector<2x1xf32> to vector<2x1xf32>
    %15 = vector.broadcast %14 : vector<2x1xf32> to vector<2x32xf32>
    %c0_3 = arith.constant 0 : index
    %c1 = arith.constant 1 : index
    %16 = vector.load %arg1[%c0_3, %c1] : memref<2x12xf32, #tpu.memory_space<vmem>>, vector<2x1xf32>
    %17 = vector.shape_cast %16 : vector<2x1xf32> to vector<2x1xf32>
    %18 = vector.broadcast %17 : vector<2x1xf32> to vector<2x32xf32>
    %c0_4 = arith.constant 0 : index
    %c2 = arith.constant 2 : index
    %19 = vector.load %arg1[%c0_4, %c2] : memref<2x12xf32, #tpu.memory_space<vmem>>, vector<2x1xf32>
    %20 = vector.shape_cast %19 : vector<2x1xf32> to vector<2x1xf32>
    %21 = vector.broadcast %20 : vector<2x1xf32> to vector<2x32xf32>
    %c0_5 = arith.constant 0 : index
    %c3 = arith.constant 3 : index
    %22 = vector.load %arg1[%c0_5, %c3] : memref<2x12xf32, #tpu.memory_space<vmem>>, vector<2x1xf32>
    %23 = vector.shape_cast %22 : vector<2x1xf32> to vector<2x1xf32>
    %24 = vector.broadcast %23 : vector<2x1xf32> to vector<2x32xf32>
    %c0_6 = arith.constant 0 : index
    %c4 = arith.constant 4 : index
    %25 = vector.load %arg1[%c0_6, %c4] : memref<2x12xf32, #tpu.memory_space<vmem>>, vector<2x1xf32>
    %26 = vector.shape_cast %25 : vector<2x1xf32> to vector<2x1xf32>
    %27 = vector.broadcast %26 : vector<2x1xf32> to vector<2x32xf32>
    %c0_7 = arith.constant 0 : index
    %c5 = arith.constant 5 : index
    %28 = vector.load %arg1[%c0_7, %c5] : memref<2x12xf32, #tpu.memory_space<vmem>>, vector<2x1xf32>
    %29 = vector.shape_cast %28 : vector<2x1xf32> to vector<2x1xf32>
    %30 = vector.broadcast %29 : vector<2x1xf32> to vector<2x32xf32>
    %c0_8 = arith.constant 0 : index
    %c6 = arith.constant 6 : index
    %31 = vector.load %arg1[%c0_8, %c6] : memref<2x12xf32, #tpu.memory_space<vmem>>, vector<2x1xf32>
    %32 = vector.shape_cast %31 : vector<2x1xf32> to vector<2x1xf32>
    %33 = vector.broadcast %32 : vector<2x1xf32> to vector<2x32xf32>
    %c0_9 = arith.constant 0 : index
    %c7 = arith.constant 7 : index
    %34 = vector.load %arg1[%c0_9, %c7] : memref<2x12xf32, #tpu.memory_space<vmem>>, vector<2x1xf32>
    %35 = vector.shape_cast %34 : vector<2x1xf32> to vector<2x1xf32>
    %36 = vector.broadcast %35 : vector<2x1xf32> to vector<2x32xf32>
    %c0_10 = arith.constant 0 : index
    %c8 = arith.constant 8 : index
    %37 = vector.load %arg1[%c0_10, %c8] : memref<2x12xf32, #tpu.memory_space<vmem>>, vector<2x1xf32>
    %38 = vector.shape_cast %37 : vector<2x1xf32> to vector<2x1xf32>
    %39 = vector.broadcast %38 : vector<2x1xf32> to vector<2x32xf32>
    %c0_11 = arith.constant 0 : index
    %c9 = arith.constant 9 : index
    %40 = vector.load %arg1[%c0_11, %c9] : memref<2x12xf32, #tpu.memory_space<vmem>>, vector<2x1xf32>
    %41 = vector.shape_cast %40 : vector<2x1xf32> to vector<2x1xf32>
    %42 = vector.broadcast %41 : vector<2x1xf32> to vector<2x32xf32>
    %c0_12 = arith.constant 0 : index
    %c10 = arith.constant 10 : index
    %43 = vector.load %arg1[%c0_12, %c10] : memref<2x12xf32, #tpu.memory_space<vmem>>, vector<2x1xf32>
    %44 = vector.shape_cast %43 : vector<2x1xf32> to vector<2x1xf32>
    %45 = vector.broadcast %44 : vector<2x1xf32> to vector<2x32xf32>
    %c0_13 = arith.constant 0 : index
    %c11 = arith.constant 11 : index
    %46 = vector.load %arg1[%c0_13, %c11] : memref<2x12xf32, #tpu.memory_space<vmem>>, vector<2x1xf32>
    %47 = vector.shape_cast %46 : vector<2x1xf32> to vector<2x1xf32>
    %48 = vector.broadcast %47 : vector<2x1xf32> to vector<2x32xf32>
    %49 = tpu.concatenate %15, %18, %21, %24, %27, %30, %33, %36, %39, %42, %45, %48 in 1 : vector<2x32xf32>, vector<2x32xf32>, vector<2x32xf32>, vector<2x32xf32>, vector<2x32xf32>, vector<2x32xf32>, vector<2x32xf32>, vector<2x32xf32>, vector<2x32xf32>, vector<2x32xf32>, vector<2x32xf32>, vector<2x32xf32> -> vector<2x384xf32>
    %50 = vector.broadcast %12 : vector<1x384xf32> to vector<2x384xf32>
    %51 = arith.mulf %49, %50 : vector<2x384xf32>
    %52 = math.cos %51 : vector<2x384xf32>
    %53 = math.sin %51 : vector<2x384xf32>
    %54 = vector.shape_cast %3 : vector<1x384xi1> to vector<1x384xi1>
    %55 = vector.broadcast %54 : vector<1x384xi1> to vector<2x384xi1>
    %56 = arith.select %55, %52, %53 : vector<2x384xi1>, vector<2x384xf32>
    %c0_14 = arith.constant 0 : index
    %c0_15 = arith.constant 0 : index
    %57 = vector.load %arg2[%c0_14, %c0_15] : memref<2x384xf32, #tpu.memory_space<vmem>>, vector<2x384xf32>
    tpu.vector_store %arg2[%c0_14, %c0_15], %56 {strides = array<i32>} : memref<2x384xf32, #tpu.memory_space<vmem>>, vector<2x384xf32>,
    return
  }
  func.func @transform_0(%arg0: i32) -> (i32, i32) {
    %c0_i32 = arith.constant 0 : i32
    %c0_i32_0 = arith.constant 0 : i32
    return %arg0, %c0_i32 : i32, i32
  }
  func.func @transform_1(%arg0: i32) -> (i32, i32) {
    %c0_i32 = arith.constant 0 : i32
    %c0_i32_0 = arith.constant 0 : i32
    return %arg0, %c0_i32 : i32, i32
  }
}

</mosaic_0001>

<bundles_post_ra>
// kernel: tpu_custom_call.1
= control target key start
LH: loop header
LB: loop body
LE: loop exit
PB: predicated region body
PF: predicated region fallthrough
CT: control target
= control target key end

     0   :  { %6 = vsyncpa [#allocation3], 0  ;;  %s1193_s0 = inlined_call_operand.hbm [shape: f32[2,12], index: 0, kind: input, shape index: {}]   ;;  %s1194_s1 = inlined_call_operand.hbm [shape: f32[2,384], index: 1, kind: output, shape index: {}]  }
   0x1   :  { %7 = vsyncpa [#allocation4], 0  ;;  %s912_s6 = smov [#allocation2]   ;;  %s864_s10 = scalar_lea.hbm %s1193_s0, 32 }
   0x2   :  { %s14_s7 = sshll.u32 %s912_s6, 4  ;;  %p865_p0 = scmp.ne.s32.totalorder %s1193_s0, %s864_s10  ;;  %s15_s7 = int_to_ptr.vmem [resolvable:$true] %s14_s7 }
   0x3   :  { %p868_p1 = scmp.lt.u32.totalorder %s864_s10, %s1193_s0 }
   0x5   :  { %p870_p2 = pnand %p868_p1, %p865_p0 }
   0x7   :  { %873 = shalt.err (!%p870_p2)
}
   0x8   :  { %s874_s15 = scalar_lea.vmem %s15_s7, 32  ;;  %p879_p4 = scmp.lt.s32.totalorder %s15_s7, %s15_s7 }
   0x9   :  { %p875_p3 = scmp.ne.s32.totalorder %s15_s7, %s874_s15  ;;  %p880_p5 = scmp.lt.s32.totalorder %s874_s15, %s874_s15 }
   0xb   :  { %p881_p6 = por %p880_p5, %p879_p4 }
   0xd   :  { %p882_p7 = pnand %p881_p6, %p875_p3 }
   0xf   :  { %885 = shalt.err (!%p882_p7)
}
  0x10   :  { %17 = dma.hbm_to_vmem [thread:$0]  %s1193_s0, 32, %s15_s7, [#allocation3]  }
  0x11   :  { %908 = dma.done.wait [#allocation3], 32  }
  0x12   :  { %909 = vsyncadd [#allocation3], 4294967264  ;;  %v21_v0 = vlaneseq  ;;  %v913_v1 = vmov 0   ;;  %v914_v2 = vmov 1   ;;  %s915_s18 = smov 96   ;;  %s916_s19 = smov 32  }
  0x13   :  { %837 = vset.pattern.permute.xlu1 %v913_v1  ;;  %838 = vset.pattern.permute.xlu0 %v914_v2  ;;  %v44_v4 = vld [vmem:[#allocation2] sm:$0x3]  ;;  %s917_s20 = smov 64   ;;  %v918_v5 = vmov 4   ;;  %v919_v6 = vmov 2   ;;  %v920_v7 = vmov 5  }
  0x14   :  { %v22_v3 = vand.u32 127, %v21_v0  ;;  %v921_v8 = vmov 7   ;;  %v922_v9 = vmov 6   ;;  %v923_v10 = vmov 10   ;;  %s935_s0 = smov [#allocation5]  }
  0x15   :  { %v924_v11 = vmov 3   ;;  %v925_v12 = vmov 11   ;;  %v926_v13 = vmov 8   ;;  %v927_v14 = vmov 9   ;;  %s767_s21 = sshll.u32 %s935_s0, 4  ;;  %s768_s21 = int_to_ptr.vmem [resolvable:$true] %s767_s21 }
  0x16   :  { %27 = vrot.lane.b32.xlu1 %v22_v3, %s915_s18  ;;  %23 = vrot.lane.b32.xlu0 %v22_v3, %s916_s19  ;;  %vm29_vm0 = vcmask 261120   ;;  %v958_v16 = vshrl.u32 %v21_v0, 7  ;;  %vm31_vm1 = vcmask 523264   ;;  %vm33_vm2 = vcmask 785408   ;;  %s886_s22 = scalar_lea.vmem %s768_s21, 96  ;;  %p891_p9 = scmp.lt.s32.totalorder %s768_s21, %s768_s21 }
  0x17   :  { %p887_p8 = scmp.ne.s32.totalorder %s768_s21, %s886_s22  ;;  %p892_p10 = scmp.lt.s32.totalorder %s886_s22, %s886_s22 }
  0x18   :  { %v105_v20 = vsub.s32 0, %v958_v16 }
  0x19   :  { %p893_p11 = por %p892_p10, %p891_p9 }
  0x1a   :  { %25 = vrot.lane.b32.xlu0 %v22_v3, %s917_s20  ;;  %47 = vperm.xlu1 %837, %v44_v4  }
  0x1b   :  { %p894_p12 = pnand %p893_p11, %p887_p8 }
  0x1e   :  { %51 = vperm.xlu0 %838, %v44_v4   ;;  %839 = vset.pattern.permute.xlu1 %v918_v5 }
  0x1f   :  { %63 = vperm.xlu1 %839, %v44_v4  }
  0x22   :  { %841 = vset.pattern.permute.xlu0 %v919_v6  ;;  %v928_v6 = vmov 683565275  }
  0x23   :  { %55 = vperm.xlu0 %841, %v44_v4   ;;  %840 = vset.pattern.permute.xlu1 %v920_v7 }
  0x24   :  { %67 = vperm.xlu1 %840, %v44_v4  }
  0x27   :  { %844 = vset.pattern.permute.xlu0 %v921_v8  ;;  %v929_v8 = vmov 2475754826  }
  0x28   :  { %842 = vset.pattern.permute.xlu1 %v922_v9  ;;  %75 = vperm.xlu0 %844, %v44_v4  }
  0x29   :  { %71 = vperm.xlu1 %842, %v44_v4  }
  0x2c   :  { %847 = vset.pattern.permute.xlu0 %v923_v10 }
  0x2d   :  { %843 = vset.pattern.permute.xlu1 %v924_v11  ;;  %87 = vperm.xlu0 %847, %v44_v4   ;;  %v930_v11 = vmov 2131351028  }
  0x2e   :  { %59 = vperm.xlu1 %843, %v44_v4  }
  0x31   :  { %849 = vset.pattern.permute.xlu0 %v925_v12 }
  0x32   :  { %845 = vset.pattern.permute.xlu1 %v926_v13  ;;  %v931_v13 = vmov 2102212464  }
  0x33   :  { %79 = vperm.xlu1 %845, %v44_v4  }
  0x37   :  { %846 = vset.pattern.permute.xlu1 %v927_v14 }
  0x38   :  { %83 = vperm.xlu1 %846, %v44_v4  }
  0x3c   :  { %848 = vset.pattern.permute.xlu1 %v925_v12 }
  0x3d   :  { %91 = vperm.xlu1 %848, %v44_v4  }
  0x88   :  { %v24_v15 = vpop.permute.xlu0 %23  ;;  %v28_v19 = vpop.permute.xlu1 %27 }
  0x89   :  { %v30_v17 = vsel %vm29_vm0, %v22_v3, %v24_v15  ;;  %v932_v15 = vmov 920167782  }
  0x8c   :  { %v26_v18 = vpop.permute.xlu0 %25 }
  0x8d   :  { %v32_v21 = vsel %vm31_vm1, %v30_v17, %v26_v18 }
  0x8e   :  { %v34_v22 = vsel %vm33_vm2, %v32_v21, %v28_v19 }
  0x8f   :  { %vm35_vm3 = vcmp.lt.s32.totalorder %v34_v22, 16  ;;  %v776_v23 = vadd.s32 4294967280, %v34_v22 }
  0x90   :  { %v731_v24 = vsel %vm35_vm3, 1, %v913_v1 }
  0x91   :  { %v37_v25 = vsel %vm35_vm3, %v34_v22, %v776_v23  ;;  %v964_v26 = vrot.slane %v731_v24, %v105_v20  ;;  %v933_v23 = vmov 1326507024  }
  0x92   :  { %v38_v27 = vcvt.s32.f32 %v37_v25 }
  0x94   :  { %v39_v28 = vmul.f32 -9.2103405, %v38_v27 }
  0x96   :  { %v41_v29 = vmul.f32 0.0625, %v39_v28 }
  0x98   :  { %v42_v30 = vmul.f32 1.442695, %v41_v29 }
  0x99   :  { %v48_v31 = vpop.permute.xlu1 %47 }
  0x9a   :  { %850 = vpow2.f32 %v42_v30 }
  0x9d   :  { %v52_v32 = vpop.permute.xlu0 %51 }
  0x9e   :  { %v64_v33 = vpop.permute.xlu1 %63  ;;  %v94_v44 = vsel %vm29_vm0, %v48_v31, %v52_v32 }
  0xa2   :  { %v56_v34 = vpop.permute.xlu0 %55 }
  0xa3   :  { %v68_v35 = vpop.permute.xlu1 %67  ;;  %v95_v45 = vsel %vm31_vm1, %v94_v44, %v56_v34 }
  0xa4   :  { %v851_v36 = vpop.eup %850  ;;  %v97_v38 = vsel %vm29_vm0, %v64_v33, %v68_v35 }
  0xa5   :  { %v968_v41 = vrot.slane %v851_v36, %v105_v20 }
  0xa7   :  { %v76_v37 = vpop.permute.xlu0 %75 }
  0xa8   :  { %v72_v39 = vpop.permute.xlu1 %71 }
  0xa9   :  { %v98_v40 = vsel %vm31_vm1, %v97_v38, %v72_v39 }
  0xaa   :  { %v99_v42 = vsel %vm33_vm2, %v98_v40, %v76_v37 }
  0xab   :  { %v972_v43 = vmul.f32 %v968_v41, %v99_v42 }
  0xad   :  { %v213_v46 = vand.u32 2147483647, %v972_v43  ;;  %v216_v47 = vand.u32 2139095040, %v972_v43  ;;  %v60_v48 = vpop.permute.xlu1 %59 }
  0xae   :  { %v96_v49 = vsel %vm33_vm2, %v95_v45, %v60_v48 }
  0xaf   :  { %v217_v50 = vshrl.u32 %v216_v47, 23  ;;  %v980_v51 = vmul.f32 %v968_v41, %v96_v49  ;;  %v220_v52 = vand.u32 8388607, %v213_v46  ;;  %v88_v47 = vpop.permute.xlu0 %87 }
  0xb1   :  { %v781_v53 = vadd.s32 4294967169, %v217_v50  ;;  %v110_v54 = vand.u32 2147483647, %v980_v51  ;;  %v113_v55 = vand.u32 2139095040, %v980_v51  ;;  %v221_v58 = vor.u32 8388608, %v220_v52 }
  0xb2   :  { %v80_v56 = vpop.permute.xlu1 %79 }
  0xb3   :  { %v223_v57 = vadd.s32 1, %v781_v53  ;;  %v114_v59 = vshrl.u32 %v113_v55, 23  ;;  %v117_v60 = vand.u32 8388607, %v110_v54  ;;  %v988_v2 = vshll.u32 %v221_v58, 8 }
  0xb5   :  { %vm224_vm4 = vcmp.gt.s32.totalorder %v223_v57, 0  ;;  %v777_v62 = vadd.s32 4294967169, %v114_v59  ;;  %v118_v3 = vor.u32 8388608, %v117_v60 }
  0xb6   :  { %v225_v61 = vsel %vm224_vm4, %v223_v57, 0 }
  0xb7   :  { %v226_v63 = vshrl.u32 %v225_v61, 5  ;;  %v227_v0 = vand.u32 31, %v225_v61  ;;  %v84_v1 = vpop.permute.xlu1 %83  ;;  %v120_v4 = vadd.s32 1, %v777_v62  ;;  %v1011_v50 = vshll.u32 %v118_v3, 8 }
  0xb8   :  { %v100_v10 = vsel %vm29_vm0, %v80_v56, %v84_v1 }
  0xb9   :  { %v228_v5 = vsub.s32 32, %v227_v0  ;;  %v230_v7 = vshll.u32 %v928_v6, %v227_v0  ;;  %v233_v9 = vshll.u32 %v929_v8, %v227_v0  ;;  %v236_v12 = vshll.u32 %v930_v11, %v227_v0 }
  0xba   :  { %v239_v14 = vshll.u32 %v931_v13, %v227_v0  ;;  %v242_v17 = vshll.u32 %v932_v15, %v227_v0  ;;  %vm245_vm5 = vcmp.lt.s32.totalorder %v226_v63, 1  ;;  %vm246_vm6 = vcmp.lt.s32.totalorder %v226_v63, 2 }
  0xbb   :  { %v231_v18 = vshrl.u32 %v929_v8, %v228_v5  ;;  %v234_v19 = vshrl.u32 %v930_v11, %v228_v5  ;;  %v237_v20 = vshrl.u32 %v931_v13, %v228_v5  ;;  %v229_v21 = vshrl.u32 %v928_v6, %v228_v5 }
  0xbc   :  { %v240_v22 = vshrl.u32 %v932_v15, %v228_v5  ;;  %v243_v24 = vshrl.u32 %v933_v23, %v228_v5  ;;  %vm247_vm7 = vcmp.lt.s32.totalorder %v226_v63, 3  ;;  %vm121_vm8 = vcmp.gt.s32.totalorder %v120_v4, 0 }
  0xbd   :  { %v232_v25 = vor.u32 %v231_v18, %v230_v7  ;;  %v235_v27 = vor.u32 %v234_v19, %v233_v9  ;;  %v238_v28 = vor.u32 %v237_v20, %v236_v12  ;;  %vm248_vm9 = vcmp.lt.s32.totalorder %v226_v63, 4  ;;  %v92_v7 = vpop.permute.xlu1 %91 }
  0xbe   :  { %v241_v29 = vor.u32 %v240_v22, %v239_v14  ;;  %v244_v30 = vor.u32 %v243_v24, %v242_v17  ;;  %v122_v31 = vsel %vm121_vm8, %v120_v4, 0  ;;  %v101_v59 = vsel %vm31_vm1, %v100_v10, %v88_v47 }
  0xbf   :  { %v249_v32 = vsel %vm245_vm5, %v229_v21, %v232_v25  ;;  %v250_v33 = vsel %vm248_vm9, %v238_v28, 2102212464  ;;  %v253_v34 = vsel %vm245_vm5, %v232_v25, %v235_v27  ;;  %v257_v35 = vsel %vm245_vm5, %v235_v27, %v238_v28 }
  0xc0   :  { %v251_v36 = vsel %vm247_vm7, %v235_v27, %v250_v33  ;;  %v254_v37 = vsel %vm248_vm9, %v241_v29, 920167782  ;;  %v258_v38 = vsel %vm248_vm9, %v244_v30, 1326507024  ;;  %v123_v39 = vshrl.u32 %v122_v31, 5 }
  0xc1   :  { %v252_v40 = vsel %vm246_vm6, %v249_v32, %v251_v36  ;;  %v255_v42 = vsel %vm247_vm7, %v238_v28, %v254_v37  ;;  %v259_v44 = vsel %vm247_vm7, %v241_v29, %v258_v38  ;;  %v124_v45 = vand.u32 31, %v122_v31 }
  0xc2   :  { %v256_v48 = vsel %vm246_vm6, %v253_v34, %v255_v42  ;;  %v260_v49 = vsel %vm246_vm6, %v257_v35, %v259_v44  ;;  %v268_v57 = vmul.u32 %v988_v2, %v252_v40  ;;  %vm142_vm10 = vcmp.lt.s32.totalorder %v123_v39, 1 }
  0xc3   :  { %v1014_v52 = vmul.u32.u64.low %v988_v2, %v260_v49  ;;  %v1015_v53 = vmul.u32.u64.high %v988_v2, %v260_v49, %v1014_v52  ;;  %v1018_v55 = vmul.u32.u64.low %v988_v2, %v256_v48  ;;  %v1019_v56 = vmul.u32.u64.high %v988_v2, %v256_v48, %v1018_v55 }
  0xc4   :  { %v125_v58 = vsub.s32 32, %v124_v45  ;;  %v127_v60 = vshll.u32 %v928_v6, %v124_v45  ;;  %v130_v61 = vshll.u32 %v929_v8, %v124_v45  ;;  %v133_v62 = vshll.u32 %v930_v11, %v124_v45 }
  0xc5   :  { %v136_v63 = vshll.u32 %v931_v13, %v124_v45  ;;  %v139_v2 = vshll.u32 %v932_v15, %v124_v45  ;;  %vm270_vm11 = vc.u32 %v1015_v53, %v1018_v55  ;;  %v271_v4 = vadd.s32 1, %v1019_v56 }
  0xc6   :  { %v128_v0 = vshrl.u32 %v929_v8, %v125_v58  ;;  %v131_v1 = vshrl.u32 %v930_v11, %v125_v58  ;;  %v134_v3 = vshrl.u32 %v931_v13, %v125_v58  ;;  %v137_v5 = vshrl.u32 %v932_v15, %v125_v58 }
  0xc7   :  { %vm143_vm12 = vcmp.lt.s32.totalorder %v123_v39, 2  ;;  %v140_v14 = vshrl.u32 %v933_v23, %v125_v58  ;;  %v272_v17 = vsel %vm270_vm11, %v271_v4, %v1019_v56  ;;  %v126_v18 = vshrl.u32 %v928_v6, %v125_v58 }
  0xc8   :  { %v129_v9 = vor.u32 %v128_v0, %v127_v60  ;;  %v132_v10 = vor.u32 %v131_v1, %v130_v61  ;;  %v135_v12 = vor.u32 %v134_v3, %v133_v62  ;;  %v138_v19 = vor.u32 %v137_v5, %v136_v63 }
  0xc9   :  { %vm145_vm13 = vcmp.lt.s32.totalorder %v123_v39, 4  ;;  %v273_v20 = vadd.s32 %v272_v17, %v268_v57  ;;  %v141_v21 = vor.u32 %v140_v14, %v139_v2  ;;  %v102_v24 = vsel %vm33_vm2, %v101_v59, %v92_v7 }
  0xca   :  { %v147_v22 = vsel %vm145_vm13, %v135_v12, 2102212464  ;;  %vm144_vm14 = vcmp.lt.s32.totalorder %v123_v39, 3  ;;  %v150_v25 = vsel %vm142_vm10, %v129_v9, %v132_v10  ;;  %v151_v27 = vsel %vm145_vm13, %v138_v19, 920167782 }
  0xcb   :  { %v154_v28 = vsel %vm142_vm10, %v132_v10, %v135_v12  ;;  %v274_v29 = vadd.s32 536870912, %v273_v20  ;;  %v146_v30 = vsel %vm142_vm10, %v126_v18, %v129_v9  ;;  %v152_v31 = vsel %vm144_vm14, %v135_v12, %v151_v27 }
  0xcc   :  { %v155_v32 = vsel %vm145_vm13, %v141_v21, 1326507024  ;;  %v148_v33 = vsel %vm144_vm14, %v132_v10, %v147_v22  ;;  %v153_v34 = vsel %vm143_vm12, %v150_v25, %v152_v31  ;;  %v1045_v36 = vmul.f32 %v968_v41, %v102_v24 }
  0xcd   :  { %v156_v35 = vsel %vm144_vm14, %v138_v19, %v155_v32  ;;  %v275_v37 = vshrl.u32 %v274_v29, 30  ;;  %v1049_v40 = vmul.u32.u64.low %v1011_v50, %v153_v34  ;;  %v1050_v42 = vmul.u32.u64.high %v1011_v50, %v153_v34, %v1049_v40 }
  0xce   :  { %v157_v38 = vsel %vm143_vm12, %v154_v28, %v156_v35  ;;  %v149_v48 = vsel %vm143_vm12, %v146_v30, %v148_v33  ;;  %v319_v49 = vand.u32 2139095040, %v1045_v36  ;;  %v316_v52 = vand.u32 2147483647, %v1045_v36 }
  0xcf   :  { %v1053_v44 = vmul.u32.u64.low %v1011_v50, %v157_v38  ;;  %v1054_v45 = vmul.u32.u64.high %v1011_v50, %v157_v38, %v1053_v44  ;;  %v276_v47 = vshll.u32 %v275_v37, 30  ;;  %v168_v56 = vadd.s32 1, %v1050_v42 }
  0xd0   :  { %v320_v57 = vshrl.u32 %v319_v49, 23  ;;  %v165_v58 = vmul.u32 %v1011_v50, %v149_v48  ;;  %v323_v39 = vand.u32 8388607, %v316_v52  ;;  %v299_v2 = vsub.s32 4, %v275_v37 }
  0xd1   :  { %v277_v41 = vsub.s32 %v273_v20, %v276_v47  ;;  %vm167_vm15 = vc.u32 %v1054_v45, %v1049_v40  ;;  %vm215_vm1 = vcmp.lt.s32.totalorder %v972_v43, 0  ;;  %v269_v10 = vadd.s32 %v1018_v55, %v1015_v53 }
  0xd2   :  { %v169_v60 = vsel %vm167_vm15, %v168_v56, %v1050_v42  ;;  %v785_v61 = vadd.s32 4294967169, %v320_v57  ;;  %v324_v5 = vor.u32 8388608, %v323_v39  ;;  %v1073_v14 = vsel %vm215_vm1, %v299_v2, %v275_v37 }
  0xd3   :  { %v279_v59 = vsub.s32 0, %v277_v41  ;;  %v170_v62 = vadd.s32 %v169_v60, %v165_v58  ;;  %v166_v17 = vadd.s32 %v1049_v40, %v1054_v45  ;;  %vm214_vm8 = vcmp.le.f32.partialorder %v213_v46, 0.7853982 }
  0xd4   :  { %v326_v0 = vadd.s32 1, %v785_v61  ;;  %v1080_v22 = vshll.u32 %v324_v5, 8  ;;  %vm112_vm10 = vcmp.lt.s32.totalorder %v980_v51, 0  ;;  %vm111_vm11 = vcmp.le.f32.partialorder %v110_v54, 0.7853982 }
  0xd5   :  { %v782_v63 = vmin.u32 %v279_v59, %v277_v41  ;;  %v171_v1 = vadd.s32 536870912, %v170_v62 }
  0xd6   :  { %vm327_vm0 = vcmp.gt.s32.totalorder %v326_v0, 0 }
  0xd7   :  { %v281_v3 = vclz %v782_v63  ;;  %v1065_v4 = vshrl.u32 %v171_v1, 30  ;;  %v328_v50 = vsel %vm327_vm0, %v326_v0, 0 }
  0xd8   :  { %v330_v9 = vand.u32 31, %v328_v50  ;;  %v1078_v21 = vshrl.u32 %v328_v50, 5 }
  0xd9   :  { %v783_v7 = vadd.s32 4294967294, %v281_v3  ;;  %v173_v12 = vshll.u32 %v1065_v4, 30 }
  0xda   :  { %v331_v18 = vsub.s32 32, %v330_v9  ;;  %v333_v53 = vshll.u32 %v928_v6, %v330_v9  ;;  %v336_v55 = vshll.u32 %v929_v8, %v330_v9  ;;  %v339_v30 = vshll.u32 %v930_v11, %v330_v9 }
  0xdb   :  { %vm784_vm2 = vcmp.lt.s32.totalorder %v783_v7, 0  ;;  %v1076_v20 = vsub.s32 %v170_v62, %v173_v12  ;;  %v342_v38 = vshll.u32 %v931_v13, %v330_v9  ;;  %vm348_vm3 = vcmp.lt.s32.totalorder %v1078_v21, 1 }
  0xdc   :  { %v284_v19 = vsel %vm784_vm2, 0, %v783_v7  ;;  %v334_v28 = vshrl.u32 %v929_v8, %v331_v18  ;;  %v337_v29 = vshrl.u32 %v930_v11, %v331_v18  ;;  %v340_v34 = vshrl.u32 %v931_v13, %v331_v18 }
  0xdd   :  { %v285_v24 = vsub.s32 32, %v284_v19  ;;  %v289_v25 = vsub.s32 4294967266, %v284_v19  ;;  %v176_v27 = vsub.s32 0, %v1076_v20  ;;  %v286_v31 = vshll.u32 %v277_v41, %v284_v19 }
  0xde   :  { %v335_v37 = vor.u32 %v334_v28, %v333_v53  ;;  %v343_v40 = vshrl.u32 %v932_v15, %v331_v18  ;;  %v338_v45 = vor.u32 %v337_v29, %v336_v55  ;;  %v341_v8 = vor.u32 %v340_v34, %v339_v30 }
  0xdf   :  { %v287_v32 = vshrl.u32 %v269_v10, %v285_v24  ;;  %v290_v33 = vadd.s32 127, %v289_v25  ;;  %v778_v35 = vmin.u32 %v176_v27, %v1076_v20  ;;  %v345_v11 = vshll.u32 %v932_v15, %v330_v9 }
  0xe0   :  { %v344_v48 = vor.u32 %v343_v40, %v342_v38  ;;  %v346_v49 = vshrl.u32 %v933_v23, %v331_v18  ;;  %v332_v57 = vshrl.u32 %v928_v6, %v331_v18  ;;  %vm350_vm4 = vcmp.lt.s32.totalorder %v1078_v21, 3 }
  0xe1   :  { %v288_v42 = vor.u32 %v287_v32, %v286_v31  ;;  %v291_v44 = vshll.u32 %v290_v33, 23  ;;  %v178_v47 = vclz %v778_v35  ;;  %vm351_vm5 = vcmp.lt.s32.totalorder %v1078_v21, 4 }
  0xe2   :  { %v347_v13 = vor.u32 %v346_v49, %v345_v11  ;;  %v353_v60 = vsel %vm351_vm5, %v341_v8, 2102212464  ;;  %v356_v15 = vsel %vm348_vm3, %v335_v37, %v338_v45  ;;  %v357_v23 = vsel %vm351_vm5, %v344_v48, 920167782 }
  0xe3   :  { %v292_v41 = vor.u32 4788187, %v291_v44  ;;  %v295_v56 = vcvt.s32.f32 %v288_v42  ;;  %v779_v58 = vadd.s32 4294967294, %v178_v47  ;;  %vm349_vm7 = vcmp.lt.s32.totalorder %v1078_v21, 2 }
  0xe4   :  { %v352_v6 = vsel %vm348_vm3, %v332_v57, %v335_v37  ;;  %v358_v61 = vsel %vm350_vm4, %v341_v8, %v357_v23  ;;  %v360_v0 = vsel %vm348_vm3, %v338_v45, %v341_v8  ;;  %v354_v2 = vsel %vm350_vm4, %v338_v45, %v353_v60 }
  0xe5   :  { %v293_v59 = vand.u32 2147483647, %v292_v41  ;;  %vm780_vm6 = vcmp.lt.s32.totalorder %v779_v58, 0  ;;  %v359_v63 = vsel %vm349_vm7, %v356_v15, %v358_v61  ;;  %v361_v5 = vsel %vm351_vm5, %v347_v13, 1326507024 }
  0xe6   :  { %v181_v39 = vsel %vm780_vm6, 0, %v779_v58  ;;  %v362_v7 = vsel %vm350_vm4, %v344_v48, %v361_v5  ;;  %v1120_v9 = vmul.u32.u64.low %v1080_v22, %v359_v63  ;;  %v1121_v10 = vmul.u32.u64.high %v1080_v22, %v359_v63, %v1120_v9 }
  0xe7   :  { %v296_v62 = vmul.f32 %v295_v56, %v293_v59  ;;  %v182_v1 = vsub.s32 32, %v181_v39  ;;  %v186_v3 = vsub.s32 4294967266, %v181_v39  ;;  %v183_v12 = vshll.u32 %v1076_v20, %v181_v39 }
  0xe8   :  { %v363_v24 = vsel %vm349_vm7, %v360_v0, %v362_v7  ;;  %v302_v20 = vsel %vm214_vm8, 0, %v1073_v14  ;;  %v374_v30 = vadd.s32 1, %v1121_v10  ;;  %v196_v38 = vsub.s32 4, %v1065_v4 }
  0xe9   :  { %v297_v50 = vxor.u32 2147483648, %v296_v62  ;;  %v184_v18 = vshrl.u32 %v166_v17, %v182_v1  ;;  %v187_v19 = vadd.s32 127, %v186_v3  ;;  %v355_v17 = vsel %vm349_vm7, %v352_v6, %v354_v2 }
  0xea   :  { %v1132_v53 = vmul.u32.u64.low %v1080_v22, %v363_v24  ;;  %v1133_v55 = vmul.u32.u64.high %v1080_v22, %v363_v24, %v1132_v53  ;;  %v371_v31 = vmul.u32 %v1080_v22, %v355_v17  ;;  %v616_v35 = vadd.s32 3, %v302_v20 }
  0xeb   :  { %v298_v25 = vsel %vm215_vm1, %v297_v50, %v296_v62  ;;  %v185_v28 = vor.u32 %v184_v18, %v183_v12  ;;  %v188_v29 = vshll.u32 %v187_v19, 23  ;;  %v306_v40 = vand.u32 3, %v302_v20 }
  0xec   :  { %v301_v27 = vsel %vm214_vm8, %v972_v43, %v298_v25  ;;  %vm373_vm9 = vc.u32 %v1133_v55, %v1120_v9  ;;  %v617_v44 = vand.u32 3, %v616_v35  ;;  %v197_v8 = vsel %vm112_vm10, %v196_v38, %v1065_v4 }
  0xed   :  { %852 = vcosq.f32 %v301_v27  ;;  %v189_v46 = vor.u32 4788187, %v188_v29  ;;  %v192_v33 = vcvt.s32.f32 %v185_v28  ;;  %v375_v34 = vsel %vm373_vm9, %v374_v30, %v1121_v10 }
  0xee   :  { %854 = vsinq.f32 %v301_v27  ;;  %v376_v37 = vadd.s32 %v375_v34, %v371_v31  ;;  %vm307_vm12 = vcmp.lt.s32.totalorder %v306_v40, 2  ;;  %vm311_vm13 = vcmp.eq.s32.totalorder %v306_v40, 2 }
  0xef   :  { %v190_v32 = vand.u32 2147483647, %v189_v46  ;;  %vm622_vm14 = vcmp.eq.s32.totalorder %v617_v44, 2  ;;  %v199_v56 = vsel %vm111_vm11, 0, %v197_v8  ;;  %vm308_vm15 = vcmp.eq.s32.totalorder %v306_v40, 0 }
  0xf0   :  { %v377_v14 = vadd.s32 536870912, %v376_v37  ;;  %vm619_vm0 = vcmp.eq.s32.totalorder %v617_v44, 0  ;;  %vm618_vm1 = vcmp.lt.s32.totalorder %v617_v44, 2  ;;  %vm305_vm2 = vweird.f32 %v972_v43 }
  0xf1   :  { %v193_v21 = vmul.f32 %v192_v33, %v190_v32  ;;  %v512_v23 = vadd.s32 3, %v199_v56  ;;  %vm736_vm3 = vcmp.eq.s32.totalorder %v964_v26, 1  ;;  %v203_v39 = vand.u32 3, %v199_v56 }
  0xf2   :  { %v1146_v45 = vshrl.u32 %v377_v14, 30  ;;  %vm202_vm4 = vweird.f32 %v980_v51  ;;  %v372_v50 = vadd.s32 %v1120_v9, %v1133_v55  ;;  %v934_v8 = vmov 1983009808  }
  0xf3   :  { %v194_v42 = vxor.u32 2147483648, %v193_v21  ;;  %v513_v3 = vand.u32 3, %v512_v23  ;;  %vm204_vm5 = vcmp.lt.s32.totalorder %v203_v39, 2  ;;  %vm205_vm6 = vcmp.eq.s32.totalorder %v203_v39, 0 }
  0xf4   :  { %v379_v11 = vshll.u32 %v1146_v45, 30  ;;  %vm208_vm8 = vcmp.eq.s32.totalorder %v203_v39, 2  ;;  %v402_v38 = vsub.s32 4, %v1146_v45 }
  0xf5   :  { %v195_v22 = vsel %vm112_vm10, %v194_v42, %v193_v21  ;;  %vm514_vm9 = vcmp.lt.s32.totalorder %v513_v3, 2  ;;  %vm515_vm10 = vcmp.eq.s32.totalorder %v513_v3, 0 }
  0xf6   :  { %v198_v48 = vsel %vm111_vm11, %v980_v51, %v195_v22  ;;  %v380_v57 = vsub.s32 %v376_v37, %v379_v11  ;;  %vm518_vm11 = vcmp.eq.s32.totalorder %v513_v3, 2 }
  0xf7   :  { %v853_v47 = vpop.eup %852  ;;  %856 = vcosq.f32 %v198_v48 }
  0xf8   :  { %v855_v49 = vpop.eup %854  ;;  %v312_v41 = vxor.u32 2147483648, %v853_v47  ;;  %858 = vsinq.f32 %v198_v48  ;;  %v382_v4 = vsub.s32 0, %v380_v57 }
  0xf9   :  { %v309_v58 = vxor.u32 2147483648, %v855_v49 }
  0xfa   :  { %v313_v54 = vsel %vm311_vm13, %v312_v41, %v855_v49  ;;  %v624_v13 = vsel %vm622_vm14, %v312_v41, %v855_v49  ;;  %v786_v61 = vmin.u32 %v382_v4, %v380_v57  ;;  %vm317_vm13 = vcmp.le.f32.partialorder %v316_v52, 0.7853982 }
  0xfb   :  { %v310_v59 = vsel %vm308_vm15, %v853_v47, %v309_v58  ;;  %v621_v60 = vsel %vm619_vm0, %v853_v47, %v309_v58  ;;  %v745_v47 = vunpack.c.l.s4 %v934_v8 }
  0xfc   :  { %v314_v15 = vsel %vm307_vm12, %v310_v59, %v313_v54  ;;  %v625_v6 = vsel %vm618_vm1, %v621_v60, %v624_v13  ;;  %v384_v0 = vclz %v786_v61  ;;  %vm318_vm12 = vcmp.lt.s32.totalorder %v1045_v36, 0 }
  0xfd   :  { %v315_v62 = vsel %vm305_vm2, nan, %v314_v15  ;;  %v626_v63 = vsel %vm305_vm2, nan, %v625_v6  ;;  %v403_v40 = vsel %vm318_vm12, %v402_v38, %v1146_v45  ;;  %v746_v49 = vunpack.c.0.s8 %v745_v47 }
  0xfe   :  { %v1158_v1 = vsel %vm736_vm3, %v315_v62, %v626_v63  ;;  %v787_v2 = vadd.s32 4294967294, %v384_v0  ;;  %v405_v44 = vsel %vm317_vm13, 0, %v403_v40 }
  0xff   :  { %v720_v22 = vadd.s32 3, %v405_v44  ;;  %v409_v48 = vand.u32 3, %v405_v44  ;;  %v749_v52 = vsub.s32 %v746_v49, %v958_v16 }
 0x100   :  { %vm788_vm7 = vcmp.lt.s32.totalorder %v787_v2, 0 }
 0x101   :  { %v857_v5 = vpop.eup %856  ;;  %v387_v10 = vsel %vm788_vm7, 0, %v787_v2  ;;  %v721_v11 = vand.u32 3, %v720_v22  ;;  %vm414_vm14 = vcmp.eq.s32.totalorder %v409_v48, 2  ;;  %vm411_vm0 = vcmp.eq.s32.totalorder %v409_v48, 0 }
 0x102   :  { %v859_v43 = vpop.eup %858  ;;  %v209_v7 = vxor.u32 2147483648, %v857_v5  ;;  %v388_v18 = vsub.s32 32, %v387_v10  ;;  %v392_v19 = vsub.s32 4294967266, %v387_v10  ;;  %v389_v25 = vshll.u32 %v380_v57, %v387_v10 }
 0x103   :  { %v206_v12 = vxor.u32 2147483648, %v859_v43  ;;  %vm726_vm15 = vcmp.eq.s32.totalorder %v721_v11, 2  ;;  %vm723_vm1 = vcmp.eq.s32.totalorder %v721_v11, 0  ;;  %vm410_vm2 = vcmp.lt.s32.totalorder %v409_v48, 2 }
 0x104   :  { %v210_v24 = vsel %vm208_vm8, %v209_v7, %v859_v43  ;;  %v520_v28 = vsel %vm518_vm11, %v209_v7, %v859_v43  ;;  %v390_v29 = vshrl.u32 %v372_v50, %v388_v18  ;;  %v393_v17 = vadd.s32 127, %v392_v19 }
 0x105   :  { %v207_v53 = vsel %vm205_vm6, %v857_v5, %v206_v12  ;;  %v517_v27 = vsel %vm515_vm10, %v857_v5, %v206_v12 }
 0x106   :  { %v211_v20 = vsel %vm204_vm5, %v207_v53, %v210_v24  ;;  %v521_v9 = vsel %vm514_vm9, %v517_v27, %v520_v28  ;;  %v391_v46 = vor.u32 %v390_v29, %v389_v25  ;;  %v394_v31 = vshll.u32 %v393_v17, 23 }
 0x107   :  { %v212_v55 = vsel %vm202_vm4, nan, %v211_v20  ;;  %v522_v30 = vsel %vm202_vm4, nan, %v521_v9  ;;  %vm722_vm4 = vcmp.lt.s32.totalorder %v721_v11, 2  ;;  %vm408_vm5 = vweird.f32 %v1045_v36 }
 0x108   :  { %v737_v32 = vsel %vm736_vm3, %v212_v55, %v522_v30  ;;  %v395_v34 = vor.u32 4788187, %v394_v31  ;;  %v398_v37 = vcvt.s32.f32 %v391_v46 }
 0x109   :  { %v743_v33 = vcombine.low %v737_v32, %v1158_v1 }
 0x10a   :  { %v396_v35 = vand.u32 2147483647, %v395_v34 }
 0x10b   :  { %v750_v16 = vrot.slane %v743_v33, %v749_v52 }
 0x10c   :  { %v399_v21 = vmul.f32 %v398_v37, %v396_v35 }
 0x10e   :  { %v400_v14 = vxor.u32 2147483648, %v399_v21 }
 0x110   :  { %v401_v51 = vsel %vm318_vm12, %v400_v14, %v399_v21 }
 0x111   :  { %v404_v42 = vsel %vm317_vm13, %v1045_v36, %v401_v51 }
 0x112   :  { %860 = vcosq.f32 %v404_v42 }
 0x113   :  { %862 = vsinq.f32 %v404_v42 }
 0x11c   :  { %v861_v41 = vpop.eup %860 }
 0x11d   :  { %v863_v56 = vpop.eup %862  ;;  %v415_v57 = vxor.u32 2147483648, %v861_v41 }
 0x11e   :  { %v412_v58 = vxor.u32 2147483648, %v863_v56 }
 0x11f   :  { %v416_v45 = vsel %vm414_vm14, %v415_v57, %v863_v56  ;;  %v728_v54 = vsel %vm726_vm15, %v415_v57, %v863_v56 }
 0x120   :  { %v413_v13 = vsel %vm411_vm0, %v861_v41, %v412_v58  ;;  %v725_v4 = vsel %vm723_vm1, %v861_v41, %v412_v58 }
 0x121   :  { %v417_v59 = vsel %vm410_vm2, %v413_v13, %v416_v45  ;;  %v729_v60 = vsel %vm722_vm4, %v725_v4, %v728_v54 }
 0x122   :  { %v418_v15 = vsel %vm408_vm5, nan, %v417_v59  ;;  %v730_v23 = vsel %vm408_vm5, nan, %v729_v60 }
 0x123   :  { %v739_v6 = vsel %vm736_vm3, %v418_v15, %v730_v23 }
 0x124   :  { %v757_v61 = vrot.slane %v739_v6, %v749_v52 }
 0x126   :  { %v758_v62 = vcombine.low %v750_v16, %v757_v61 }
 0x128   :  { %760 = vst [vmem:[#allocation5] sm:$0x3f] %v758_v62 }
 0x129   :  { %897 = shalt.err (!%p894_p12)
}
 0x12a   :  { %s898_s25 = scalar_lea.hbm %s1194_s1, 96 }
 0x12b   :  { %p899_p13 = scmp.ne.s32.totalorder %s1194_s1, %s898_s25  ;;  %p902_p0 = scmp.lt.u32.totalorder %s898_s25, %s1194_s1 }
 0x12d   :  { %p904_p1 = pnand %p902_p0, %p899_p13 }
 0x12f   :  { %907 = shalt.err (!%p904_p1)
}
 0x130   :  { %770 = dma.vmem_to_hbm [thread:$0]  %s768_s21, 96, %s1194_s1, [#allocation4]  }
 0x131   :  { %910 = dma.done.wait [#allocation4], 96  }
 0x132   :  { %911 = vsyncadd [#allocation4], 4294967200 }
 0x133   :  { %774 = vsyncpa [#allocation3], 1 }
 0x134   :  { %775 = vsyncpa [#allocation4], 1 }

</bundles_post_ra>
